<compile_context>
chip_gen: v6e
topology: v6e:2x2x1
jax: 0.10.0
libtpu: 0.0.40
codegen_flags: <defaults>
</compile_context>

<pallas_src>
import functools

import jax
import jax.numpy as jnp
from jax.experimental import pallas as pl
from jax.experimental.pallas import tpu as pltpu

_LANE = 128
_SUBLANE = 8

# Per-generation (input-block bytes, vmem_limit_bytes). Blocks are sized in the
# I/O dtype; with default double-buffering of input + output the VMEM need is
# 4x the block size, which each limit below covers with headroom.
_GEN_CONFIG = {
    "v5e":     (2 * 1024 * 1024, 24 * 1024 * 1024),
    "v6e":     (4 * 1024 * 1024, 32 * 1024 * 1024),
    "v7x":     (6 * 1024 * 1024, 40 * 1024 * 1024),
    "unknown": (2 * 1024 * 1024, None),              # conservative fallback
}


def _chip_generation():
    """Best-effort TPU generation detection (conservative fallback otherwise)."""
    try:
        kind = jax.devices()[0].device_kind.lower()
    except Exception:  # pragma: no cover - no device / CPU fallback
        return "unknown"
    if "v5 lite" in kind or "v5lite" in kind or "v5e" in kind:
        return "v5e"
    if "v6" in kind:
        return "v6e"
    if "v7" in kind or "7x" in kind:
        return "v7x"
    return "unknown"


def _binary_act_kernel(x_ref, o_ref, *, scale, upcast):
    x = x_ref[...]
    if scale == 0.0:
        # Default config (t=0.0, soft=True): binary_tanh == clamp(x, -1, 1).
        if upcast:
            y = jnp.clip(x.astype(jnp.float32), -1.0, 1.0)
        else:
            # bf16-native clip on v6e/v7x: no f32 round-trip, half the VALU work.
            one = jnp.asarray(1.0, dtype=x.dtype)
            y = jnp.clip(x, -one, one)
    else:
        xf = x.astype(jnp.float32)
        h = jnp.clip((xf + 1.0) * 0.5, 0.0, 1.0)               # hard_sigmoid
        if scale >= 1.0:
            sr = jnp.round(h)                                   # half-to-even == torch.round
        else:  # any scale < 1 (incl. negative) uses the torch blend formula
            sr = scale * jnp.round(h) + (1.0 - scale) * h       # soft_round
        y = 2.0 * sr - 1.0                                      # binary_tanh
    o_ref[...] = y.astype(o_ref.dtype)


def _elementwise(x, scale):
    """Plain-jnp forward (used for the <128-element tail / tiny inputs)."""
    if scale == 0.0:
        return jnp.clip(x, -1.0, 1.0).astype(x.dtype)
    xf = x.astype(jnp.float32)
    h = jnp.clip((xf + 1.0) * 0.5, 0.0, 1.0)
    if scale >= 1.0:
        sr = jnp.round(h)
    else:
        sr = scale * jnp.round(h) + (1.0 - scale) * h
    return (2.0 * sr - 1.0).astype(x.dtype)


def _choose_lanes(n_main):
    """Widest lane-dense view of a flat length-n_main (multiple of 128) array."""
    for lanes in (4096, 2048, 1024, 512, 256, 128):
        if n_main % lanes == 0:
            return lanes
    return _LANE  # unreachable: n_main is a multiple of 128


def binary_activation(x, *, t=0.0, soft=True, stochastic=False, donate=False):
    """Forward pass of BinaryActivation(t, soft, stochastic) on an NCHW tensor."""
    if stochastic:
        # TODO(synk): stochastic path (soft_bernoulli of sigmoid(x)) needs in-kernel
        # PRNG (pltpu.prng_seed / pltpu.prng_random_bits); not implemented here.
        raise NotImplementedError("stochastic binary activation not implemented")

    scale = float(t) if soft else 1.0

    orig_shape = x.shape
    orig_dtype = x.dtype
    n = x.size

    gen = _chip_generation()
    block_bytes, vmem_limit = _GEN_CONFIG[gen]

    flat = x.reshape(-1)
    n_main = (n // _LANE) * _LANE
    if n_main == 0:
        # Fewer than 128 elements: not worth a kernel launch.
        return _elementwise(flat, scale).reshape(orig_shape)

    main = flat if n_main == n else flat[:n_main]
    lanes = _choose_lanes(n_main)
    rows = n_main // lanes
    x2d = main.reshape(rows, lanes)

    itemsize = jnp.dtype(orig_dtype).itemsize
    # Packed-row granularity: 8 rows for 32-bit, 16 for bf16, 32 for int8/fp8.
    row_align = _SUBLANE * max(1, 4 // itemsize)

    # Size the row-block so each input block is ~block_bytes in the I/O dtype.
    block_rows = max(1, block_bytes // (lanes * itemsize))
    if block_rows >= rows:
        block_rows = rows            # whole array in one block (full-dim block is legal)
    else:
        block_rows = max(row_align, (block_rows // row_align) * row_align)

    # v7x: make sure the "parallel" grid axis has >= 2 steps for non-tiny
    # arrays so both TensorCores get work.
    if (gen == "v7x" and block_rows == rows and rows >= 2 * row_align
            and n_main * itemsize > (1 << 20)):
        block_rows = pl.cdiv(pl.cdiv(rows, 2), row_align) * row_align

    # bf16 I/O on bf16-native VPUs (v6e/v7x) clips without an f32 round-trip.
    upcast = not (orig_dtype == jnp.bfloat16 and gen in ("v6e", "v7x"))

    kernel = functools.partial(_binary_act_kernel, scale=scale, upcast=upcast)
    out2d = pl.pallas_call(
        kernel,
        out_shape=jax.ShapeDtypeStruct((rows, lanes), orig_dtype),
        grid=(pl.cdiv(rows, block_rows),),
        in_specs=[pl.BlockSpec((block_rows, lanes), lambda i: (i, 0))],
        out_specs=pl.BlockSpec((block_rows, lanes), lambda i: (i, 0)),
        compiler_params=pltpu.CompilerParams(
            dimension_semantics=("parallel",),
            vmem_limit_bytes=vmem_limit),
        cost_estimate=pl.CostEstimate(
            flops=3 * n_main,
            transcendentals=0,
            bytes_accessed=2 * n_main * itemsize),
        input_output_aliases=({0: 0} if donate else {}),
    )(x2d)

    if n_main == n:
        return out2d.reshape(orig_shape)
    # Rare fallback: <128-element tail computed directly (no full-tensor pad/slice).
    tail_out = _elementwise(flat[n_main:], scale)
    return jnp.concatenate([out2d.reshape(-1), tail_out]).reshape(orig_shape)


def _reference(x, *, t=0.0, soft=True):
    """Literal (non-stochastic) torch arithmetic, in f32."""
    scale = float(t) if soft else 1.0
    xf = x.astype(jnp.float32)
    h = jnp.clip((xf + 1.0) * 0.5, 0.0, 1.0)
    if scale >= 1.0:
        sr = jnp.round(h)
    else:
        sr = scale * jnp.round(h) + (1.0 - scale) * h
    return (2.0 * sr - 1.0).astype(x.dtype)


if __name__ == "__main__":
    key = jax.random.PRNGKey(0)
    k1, k2 = jax.random.split(key)

    # NCHW input, small shapes (batch=2, channels=4, 16x16 spatial).
    x = jax.random.normal(k1, (2, 4, 16, 16), dtype=jnp.float32) * 2.0

    # Default module config: BinaryActivation(t=0.0, soft=True, stochastic=False)
    y = jax.block_until_ready(binary_activation(x, t=0.0, soft=True))
    assert y.shape == x.shape and y.dtype == x.dtype
    assert jnp.allclose(y, _reference(x, t=0.0, soft=True), atol=1e-6), "mismatch (t=0.0)"

    # Hard-round path (soft=False -> scale=1).
    y_hard = jax.block_until_ready(binary_activation(x, soft=False))
    assert jnp.allclose(y_hard, _reference(x, soft=False), atol=1e-6), "mismatch (hard)"

    # Soft blend path (0 < t < 1).
    y_soft = jax.block_until_ready(binary_activation(x, t=0.5, soft=True))
    assert jnp.allclose(y_soft, _reference(x, t=0.5, soft=True), atol=1e-6), "mismatch (t=0.5)"

    # Odd numel (exercises the main-body + tiny-tail fallback, no pad pass).
    x_odd = jax.random.normal(k2, (2, 3, 7, 5), dtype=jnp.float32)
    y_odd = jax.block_until_ready(binary_activation(x_odd))
    assert y_odd.shape == x_odd.shape
    assert jnp.allclose(y_odd, _reference(x_odd), atol=1e-6), "mismatch (odd numel)"

    # bf16 I/O (native bf16 clip on v6e/v7x, f32 path elsewhere).
    x_bf16 = x.astype(jnp.bfloat16)
    y_bf16 = jax.block_until_ready(binary_activation(x_bf16, t=0.0))
    assert y_bf16.dtype == jnp.bfloat16
    assert jnp.allclose(y_bf16.astype(jnp.float32),
                        jnp.clip(x_bf16.astype(jnp.float32), -1.0, 1.0),
                        atol=1e-6), "mismatch (bf16)"

    print("KERNEL_OK")
</pallas_src>

<mosaic_0001>
module attributes {stable_mosaic.version = 11 : i64} {
  func.func @_binary_act_kernel(%arg0: i32, %arg1: memref<1x2048xf32, #tpu.memory_space<vmem>>, %arg2: memref<1x2048xf32, #tpu.memory_space<vmem>>) attributes {dimension_semantics = [#tpu.dimension_semantics<parallel>], iteration_bounds = array<i64: 1>, scalar_prefetch = 0 : i64, scratch_operands = 0 : i64, tpu.core_type = #tpu.core_type<tc>, window_params = [{transform_indices = @transform_0, window_bounds = array<i64: 1, 2048>}, {transform_indices = @transform_1, window_bounds = array<i64: 1, 2048>}]} {
    %c0 = arith.constant 0 : index
    %c0_0 = arith.constant 0 : index
    %0 = vector.load %arg1[%c0, %c0_0] : memref<1x2048xf32, #tpu.memory_space<vmem>>, vector<1x2048xf32>
    %cst = arith.constant -1.000000e+00 : f32
    %cst_1 = arith.constant 1.000000e+00 : f32
    %1 = vector.broadcast %cst : f32 to vector<1x2048xf32>
    %2 = arith.maximumf %1, %0 : vector<1x2048xf32>
    %3 = vector.broadcast %cst_1 : f32 to vector<1x2048xf32>
    %4 = arith.minimumf %3, %2 : vector<1x2048xf32>
    %c0_2 = arith.constant 0 : index
    %c0_3 = arith.constant 0 : index
    %5 = vector.load %arg2[%c0_2, %c0_3] : memref<1x2048xf32, #tpu.memory_space<vmem>>, vector<1x2048xf32>
    tpu.vector_store %arg2[%c0_2, %c0_3], %4 {strides = array<i32>} : memref<1x2048xf32, #tpu.memory_space<vmem>>, vector<1x2048xf32>,
    return
  }
  func.func @transform_0(%arg0: i32) -> (i32, i32) {
    %c0_i32 = arith.constant 0 : i32
    %c0_i32_0 = arith.constant 0 : i32
    return %arg0, %c0_i32 : i32, i32
  }
  func.func @transform_1(%arg0: i32) -> (i32, i32) {
    %c0_i32 = arith.constant 0 : i32
    %c0_i32_0 = arith.constant 0 : i32
    return %arg0, %c0_i32 : i32, i32
  }
}

</mosaic_0001>

<bundles_post_ra>
// kernel: tpu_custom_call.1
= control target key start
LH: loop header
LB: loop body
LE: loop exit
PB: predicated region body
PF: predicated region fallthrough
CT: control target
= control target key end

     0   :  { %6 = vsyncpa [#allocation3], 0  ;;  %s110_s0 = inlined_call_operand.hbm [shape: f32[1,2048], index: 0, kind: input, shape index: {}]   ;;  %s111_s1 = inlined_call_operand.hbm [shape: f32[1,2048], index: 1, kind: output, shape index: {}]  }
   0x1   :  { %7 = vsyncpa [#allocation4], 0  ;;  %s92_s6 = smov [#allocation2]  }
   0x2   :  { %s14_s7 = sshll.u32 %s92_s6, 4  ;;  %s15_s7 = int_to_ptr.vmem [resolvable:$true] %s14_s7 }
   0x3   :  { %s56_s8 = scalar_lea.vmem %s15_s7, 256  ;;  %p61_p1 = scmp.lt.s32.totalorder %s15_s7, %s15_s7 }
   0x4   :  { %p57_p0 = scmp.ne.s32.totalorder %s15_s7, %s56_s8  ;;  %p62_p2 = scmp.lt.s32.totalorder %s56_s8, %s56_s8 }
   0x6   :  { %p63_p3 = por %p62_p2, %p61_p1 }
   0x8   :  { %p64_p4 = pnand %p63_p3, %p57_p0 }
   0xa   :  { %67 = shalt.err (!%p64_p4)
}
   0xb   :  { %17 = dma.hbm_to_vmem [thread:$0]  %s110_s0, 256, %s15_s7, [#allocation3]  }
   0xc   :  { %88 = dma.done.wait [#allocation3], 256  }
   0xd   :  { %89 = vsyncadd [#allocation3], 4294967040  ;;  %s93_s11 = smov [#allocation5]   ;;  %v21_v0 = vld [vmem:[#allocation2] sm:$0xff]  ;;  %v22_v1 = vld [vmem:[#allocation2 + $0x8] sm:$0xff] }
   0xe   :  { %s35_s12 = sshll.u32 %s93_s11, 4  ;;  %v44_v2 = vclamps-f32 %v21_v0, 1.0  ;;  %v45_v3 = vclamps-f32 %v22_v1, 1.0  ;;  %s36_s12 = int_to_ptr.vmem [resolvable:$true] %s35_s12 }
   0xf   :  { %s68_s13 = scalar_lea.vmem %s36_s12, 256  ;;  %p73_p6 = scmp.lt.s32.totalorder %s36_s12, %s36_s12 }
  0x10   :  { %27 = vst [vmem:[#allocation5] sm:$0xff] %v44_v2  ;;  %28 = vst [vmem:[#allocation5 + $0x8] sm:$0xff] %v45_v3  ;;  %p69_p5 = scmp.ne.s32.totalorder %s36_s12, %s68_s13  ;;  %p74_p7 = scmp.lt.s32.totalorder %s68_s13, %s68_s13 }
  0x12   :  { %p75_p8 = por %p74_p7, %p73_p6 }
  0x14   :  { %p76_p9 = pnand %p75_p8, %p69_p5 }
  0x16   :  { %79 = shalt.err (!%p76_p9)
}
  0x17   :  { %38 = dma.vmem_to_hbm [thread:$0]  %s36_s12, 256, %s111_s1, [#allocation4]  }
  0x18   :  { %90 = dma.done.wait [#allocation4], 256  }
  0x19   :  { %91 = vsyncadd [#allocation4], 4294967040 }
  0x1a   :  { %42 = vsyncpa [#allocation3], 1 }
  0x1b   :  { %43 = vsyncpa [#allocation4], 1 }

</bundles_post_ra>
